<compile_context>
chip_gen: v7x
topology: tpu7x:2x2x1
jax: 0.10.0
libtpu: 0.0.40
codegen_flags: <defaults>
</compile_context>

<pallas_src>
import functools

import jax
import jax.numpy as jnp
from jax.experimental import pallas as pl
from jax.experimental.pallas import tpu as pltpu


def _round_up(x, m):
    return (x + m - 1) // m * m


def _cdiv(a, b):
    return (a + b - 1) // b


def _make_mlp_kernel(relu_flags):
    """Fused MLP kernel. Ref order: (x, w0, b0, w1, b1, ..., out).

    x:  (TM, in_pad)          bf16 activation tile
    wi: (in_pad_i, out_pad_i) bf16 (already transposed to (in, out))
    bi: (1, out_pad_i)        f32
    """
    n_layers = len(relu_flags)

    def kernel(*refs):
        x_ref = refs[0]
        out_ref = refs[-1]
        h = x_ref[...]                                   # bf16, no f32 upcast
        for i in range(n_layers):
            w_ref = refs[1 + 2 * i]
            b_ref = refs[2 + 2 * i]
            if relu_flags[i]:
                h = jnp.maximum(h, 0)                    # bf16 ReLU (exact)
            # bf16 MXU matmul, f32 accumulation (no in-kernel transpose).
            acc = jnp.dot(h, w_ref[...], preferred_element_type=jnp.float32)
            acc = acc + b_ref[...]                       # f32 bias add
            if i + 1 < n_layers:
                h = acc.astype(jnp.bfloat16)             # next ReLU runs in bf16
            else:
                out_ref[...] = acc.astype(out_ref.dtype)

    return kernel


def init_mlp_params(key, layer_sizes):
    """PyTorch-style init: U(-1/sqrt(fan_in), 1/sqrt(fan_in)); W is (out, in)."""
    params = []
    for i in range(len(layer_sizes) - 1):
        fan_in, fan_out = layer_sizes[i], layer_sizes[i + 1]
        key, kw, kb = jax.random.split(key, 3)
        bound = 1.0 / jnp.sqrt(jnp.float32(fan_in))
        w = jax.random.uniform(kw, (fan_out, fan_in), jnp.float32, -bound, bound)
        b = jax.random.uniform(kb, (1, fan_out), jnp.float32, -bound, bound)
        params.append((w, b))
    return params


def prepare_mlp_params(params, in_features):
    """One-time staging of weights for the kernel.

    Pre-transposes each PyTorch-layout W (out, in) to (in, out), zero-pads
    feature dims to multiples of 128 (lane-dense, no masked vst), casts
    weights to bf16 and biases to f32.  Zero padding is semantics-preserving.
    Call ONCE and reuse the result across forward calls.
    """
    dims = [in_features] + [w.shape[0] for w, _ in params]
    pdims = [_round_up(d, 128) for d in dims]
    staged = []
    for li, (w, b) in enumerate(params):
        in_p, out_p = pdims[li], pdims[li + 1]
        wt = jnp.zeros((in_p, out_p), jnp.bfloat16)
        wt = wt.at[: w.shape[1], : w.shape[0]].set(
            jnp.asarray(w, jnp.float32).T.astype(jnp.bfloat16))
        bp = jnp.zeros((1, out_p), jnp.float32)
        bp = bp.at[:, : w.shape[0]].set(jnp.asarray(b, jnp.float32).reshape(1, -1))
        staged.append(wt)
        staged.append(bp)
    return tuple(staged)


@functools.partial(jax.jit,
                   static_argnames=("out_features", "final_relu", "block_m"))
def _mlp_forward_pallas(x, staged, out_features, final_relu=False, block_m=256):
    n_layers = len(staged) // 2
    final_relu_layer = n_layers if final_relu else n_layers - 1
    relu_flags = tuple(i < final_relu_layer for i in range(n_layers))

    B, in_features = x.shape
    in_pad = staged[0].shape[0]
    out_pad = staged[-1].shape[1]
    out_itemsize = jnp.dtype(x.dtype).itemsize

    # Batch tile: bf16 sublane packing is 16 rows; MXU prefers large M, so
    # real batches use block_m (multiple of 256).
    tm = block_m if B >= block_m else _round_up(B, 16)
    # Give the "parallel" batch axis >= 2 steps whenever the batch allows it,
    # so v7x's two TensorCores both get work (a grid of 1 idles one TC).
    if B >= 32 and _round_up(B, tm) == tm:
        tm = _round_up(_cdiv(B, 2), 16)
    b_pad = _round_up(B, tm)
    grid_m = b_pad // tm

    # Stage x: skip the pad/copy entirely when it is already aligned.
    if in_features == in_pad and B == b_pad:
        x_p = x.astype(jnp.bfloat16)
    else:
        x_p = jnp.zeros((b_pad, in_pad), jnp.bfloat16)
        x_p = x_p.at[:B, :in_features].set(x.astype(jnp.bfloat16))

    # x / out tiles are pipelined (double-buffered) over the batch grid;
    # weights and biases are grid-invariant, so keep a single VMEM-resident
    # copy via an untiled memory_space=VMEM spec (no wasted double buffer).
    in_specs = [pl.BlockSpec((tm, in_pad), lambda i: (i, 0))]
    for _ in range(2 * n_layers):
        in_specs.append(pl.BlockSpec(memory_space=pltpu.MemorySpace.VMEM))
    out_spec = pl.BlockSpec((tm, out_pad), lambda i: (i, 0))
    out_shape = jax.ShapeDtypeStruct((b_pad, out_pad), x.dtype)

    # Cost estimate: lets XLA schedule the surrounding pad/cast ops.
    weight_bytes = sum(int(a.size) * a.dtype.itemsize for a in staged)
    flops = 2 * b_pad * sum(
        staged[2 * i].shape[0] * staged[2 * i].shape[1] for i in range(n_layers))
    bytes_accessed = (weight_bytes + b_pad * in_pad * 2
                      + b_pad * out_pad * out_itemsize)
    cost = pl.CostEstimate(flops=int(flops), transcendentals=0,
                           bytes_accessed=int(bytes_accessed))

    # Explicit VMEM budget: resident weights/biases + double-buffered x/out
    # tiles + f32/bf16 intermediates.  Capped at 64 MiB so the same budget
    # also holds per-TensorCore on v7x; much wider nets would need an
    # output-feature grid axis instead of fully resident weights.
    max_pad = max([in_pad] + [staged[2 * i].shape[1] for i in range(n_layers)])
    tile_bytes = 2 * (tm * in_pad * 2 + tm * out_pad * out_itemsize)
    interm_bytes = 2 * tm * max_pad * (4 + 2)
    vmem_need = weight_bytes + tile_bytes + interm_bytes + (2 << 20)
    vmem_limit = int(min(max(vmem_need, 8 << 20), 64 << 20))

    out = pl.pallas_call(
        _make_mlp_kernel(relu_flags),
        out_shape=out_shape,
        grid=(grid_m,),
        in_specs=in_specs,
        out_specs=out_spec,
        compiler_params=pltpu.CompilerParams(
            dimension_semantics=("parallel",),
            vmem_limit_bytes=vmem_limit),
        cost_estimate=cost,
    )(x_p, *staged)

    # Strip batch + lane padding.
    return out[:B, :out_features]


@functools.partial(jax.jit, static_argnames=("out_features", "final_relu"))
def _mlp_forward_xla(x, staged, out_features, final_relu=False):
    """Plain-XLA fallback on the same staged (padded, transposed) params."""
    n_layers = len(staged) // 2
    final_relu_layer = n_layers if final_relu else n_layers - 1
    h = x.astype(jnp.bfloat16)
    if staged[0].shape[0] != x.shape[1]:
        h = jnp.pad(h, ((0, 0), (0, staged[0].shape[0] - x.shape[1])))
    for i in range(n_layers):
        if i < final_relu_layer:
            h = jnp.maximum(h, 0)
        a = jnp.dot(h, staged[2 * i],
                    preferred_element_type=jnp.float32) + staged[2 * i + 1]
        h = a.astype(jnp.bfloat16) if i + 1 < n_layers else a
    return h[:, :out_features].astype(x.dtype)


def mlp_forward(x, staged_params, out_features, final_relu=False,
                block_m=256, use_pallas=None):
    """Forward pass of the PyTorch MLP using pre-staged params.

    use_pallas=None -> auto dispatch: the fused kernel only pays off when the
    feature widths actually fill 128 lanes and the batch fills the MXU's M
    dimension; tiny problems are pallas_call-overhead dominated and go to XLA.
    """
    if use_pallas is None:
        use_pallas = (x.shape[0] >= 128
                      and min(x.shape[1], out_features) >= 128)
    if use_pallas:
        return _mlp_forward_pallas(x, staged_params, out_features,
                                   final_relu=final_relu, block_m=block_m)
    return _mlp_forward_xla(x, staged_params, out_features,
                            final_relu=final_relu)


def mlp_reference(x, params, final_relu=False):
    """Pure-JAX f32 reference matching the PyTorch module."""
    num_layers = len(params)
    final_relu_layer = num_layers if final_relu else num_layers - 1
    h = x.astype(jnp.float32)
    for i, (w, b) in enumerate(params):
        if i < final_relu_layer:
            h = jnp.maximum(h, 0.0)
        h = h @ w.T + b
    return h.astype(x.dtype)


if __name__ == "__main__":
    key = jax.random.PRNGKey(0)
    layer_sizes = [32, 64, 16]       # MLP([32, 64, 16], final_relu=False)
    batch = 8

    key, kx, kp = jax.random.split(key, 3)
    x = jax.random.normal(kx, (batch, layer_sizes[0]), jnp.float32)
    params = init_mlp_params(kp, layer_sizes)

    # One-time parameter staging (transpose / pad / bf16 cast), reused across
    # every forward call instead of being rebuilt inside the jit.
    staged = prepare_mlp_params(params, layer_sizes[0])
    out_features = layer_sizes[-1]

    # Force the Pallas path so the kernel itself is exercised at these tiny
    # test shapes (the auto-dispatch heuristic would pick plain XLA here).
    out = mlp_forward(x, staged, out_features, final_relu=False,
                      use_pallas=True)
    out = jax.block_until_ready(out)

    ref = mlp_reference(x, params, final_relu=False)
    assert out.shape == (batch, out_features), out.shape
    # bf16 matmul with f32 accumulation -> loosened tolerance vs f32 reference.
    assert jnp.allclose(out, ref, atol=2e-2, rtol=2e-2), "mismatch vs reference"

    print("KERNEL_OK")
</pallas_src>

<mosaic_0001>
module attributes {stable_mosaic.version = 11 : i64} {
  func.func @kernel(%arg0: i32, %arg1: memref<16x128xbf16, #tpu.memory_space<vmem>>, %arg2: memref<128x128xbf16, #tpu.memory_space<vmem>>, %arg3: memref<1x128xf32, #tpu.memory_space<vmem>>, %arg4: memref<128x128xbf16, #tpu.memory_space<vmem>>, %arg5: memref<1x128xf32, #tpu.memory_space<vmem>>, %arg6: memref<16x128xf32, #tpu.memory_space<vmem>>) attributes {dimension_semantics = [#tpu.dimension_semantics<parallel>], iteration_bounds = array<i64: 1>, scalar_prefetch = 0 : i64, scratch_operands = 0 : i64, tpu.core_type = #tpu.core_type<tc>, window_params = [{transform_indices = @transform_0, window_bounds = array<i64: 16, 128>}, {pipeline_mode = #tpu.pipeline_mode<synchronous>, transform_indices = @transform_1, window_bounds = array<i64: 128, 128>}, {pipeline_mode = #tpu.pipeline_mode<synchronous>, transform_indices = @transform_2, window_bounds = array<i64: 1, 128>}, {pipeline_mode = #tpu.pipeline_mode<synchronous>, transform_indices = @transform_3, window_bounds = array<i64: 128, 128>}, {pipeline_mode = #tpu.pipeline_mode<synchronous>, transform_indices = @transform_4, window_bounds = array<i64: 1, 128>}, {transform_indices = @transform_5, window_bounds = array<i64: 16, 128>}]} {
    %c0 = arith.constant 0 : index
    %c0_0 = arith.constant 0 : index
    %0 = vector.load %arg1[%c0, %c0_0] : memref<16x128xbf16, #tpu.memory_space<vmem>>, vector<16x128xbf16>
    %cst = arith.constant 0.000000e+00 : bf16
    %1 = vector.broadcast %cst : bf16 to vector<16x128xbf16>
    %2 = arith.maximumf %0, %1 : vector<16x128xbf16>
    %c0_1 = arith.constant 0 : index
    %c0_2 = arith.constant 0 : index
    %3 = vector.load %arg2[%c0_1, %c0_2] : memref<128x128xbf16, #tpu.memory_space<vmem>>, vector<128x128xbf16>
    %cst_3 = arith.constant dense<0.000000e+00> : vector<16x128xf32>
    %4 = tpu.matmul %2, %3, %cst_3 {dimension_numbers = #tpu.dot_dimension_numbers<[1], [0], [0], [1], [0, 0, 1, 1], [], []>} : vector<16x128xbf16>, vector<128x128xbf16>, vector<16x128xf32> -> vector<16x128xf32>
    %c0_4 = arith.constant 0 : index
    %c0_5 = arith.constant 0 : index
    %5 = vector.load %arg3[%c0_4, %c0_5] : memref<1x128xf32, #tpu.memory_space<vmem>>, vector<1x128xf32>
    %6 = vector.broadcast %5 : vector<1x128xf32> to vector<16x128xf32>
    %7 = arith.addf %4, %6 : vector<16x128xf32>
    %8 = arith.truncf %7 : vector<16x128xf32> to vector<16x128xbf16>
    %c0_6 = arith.constant 0 : index
    %c0_7 = arith.constant 0 : index
    %9 = vector.load %arg4[%c0_6, %c0_7] : memref<128x128xbf16, #tpu.memory_space<vmem>>, vector<128x128xbf16>
    %cst_8 = arith.constant dense<0.000000e+00> : vector<16x128xf32>
    %10 = tpu.matmul %8, %9, %cst_8 {dimension_numbers = #tpu.dot_dimension_numbers<[1], [0], [0], [1], [0, 0, 1, 1], [], []>} : vector<16x128xbf16>, vector<128x128xbf16>, vector<16x128xf32> -> vector<16x128xf32>
    %c0_9 = arith.constant 0 : index
    %c0_10 = arith.constant 0 : index
    %11 = vector.load %arg5[%c0_9, %c0_10] : memref<1x128xf32, #tpu.memory_space<vmem>>, vector<1x128xf32>
    %12 = vector.broadcast %11 : vector<1x128xf32> to vector<16x128xf32>
    %13 = arith.addf %10, %12 : vector<16x128xf32>
    %c0_11 = arith.constant 0 : index
    %c0_12 = arith.constant 0 : index
    %14 = vector.load %arg6[%c0_11, %c0_12] : memref<16x128xf32, #tpu.memory_space<vmem>>, vector<16x128xf32>
    tpu.vector_store %arg6[%c0_11, %c0_12], %13 {strides = array<i32>} : memref<16x128xf32, #tpu.memory_space<vmem>>, vector<16x128xf32>,
    return
  }
  func.func @transform_0(%arg0: i32) -> (i32, i32) {
    %c0_i32 = arith.constant 0 : i32
    %c0_i32_0 = arith.constant 0 : i32
    return %arg0, %c0_i32 : i32, i32
  }
  func.func @transform_1(%arg0: i32) -> (i32, i32) {
    %c0_i32 = arith.constant 0 : i32
    %c0_i32_0 = arith.constant 0 : i32
    %c0_i32_1 = arith.constant 0 : i32
    return %c0_i32, %c0_i32_0 : i32, i32
  }
  func.func @transform_2(%arg0: i32) -> (i32, i32) {
    %c0_i32 = arith.constant 0 : i32
    %c0_i32_0 = arith.constant 0 : i32
    %c0_i32_1 = arith.constant 0 : i32
    return %c0_i32, %c0_i32_0 : i32, i32
  }
  func.func @transform_3(%arg0: i32) -> (i32, i32) {
    %c0_i32 = arith.constant 0 : i32
    %c0_i32_0 = arith.constant 0 : i32
    %c0_i32_1 = arith.constant 0 : i32
    return %c0_i32, %c0_i32_0 : i32, i32
  }
  func.func @transform_4(%arg0: i32) -> (i32, i32) {
    %c0_i32 = arith.constant 0 : i32
    %c0_i32_0 = arith.constant 0 : i32
    %c0_i32_1 = arith.constant 0 : i32
    return %c0_i32, %c0_i32_0 : i32, i32
  }
  func.func @transform_5(%arg0: i32) -> (i32, i32) {
    %c0_i32 = arith.constant 0 : i32
    %c0_i32_0 = arith.constant 0 : i32
    return %arg0, %c0_i32 : i32, i32
  }
}

</mosaic_0001>

<bundles_post_ra>
// kernel: _mlp_forward_pallas.1
= control target key start
LH: loop header
LB: loop body
LE: loop exit
PB: predicated region body
PF: predicated region fallthrough
CT: control target
= control target key end

     0   :  { %10 = vsyncpa [#allocation3], 0  ;;  %s519_s0 = inlined_call_operand.vmem [shape: bf16[16,128], index: 0, kind: input, shape index: {}]   ;;  %s520_s1 = inlined_call_operand.hbm [shape: bf16[128,128], index: 1, kind: input, shape index: {}]   ;;  %s521_s2 = inlined_call_operand.vmem [shape: f32[1,128], index: 2, kind: input, shape index: {}]   ;;  %s522_s3 = inlined_call_operand.hbm [shape: bf16[128,128], index: 3, kind: input, shape index: {}]   ;;  %s523_s4 = inlined_call_operand.vmem [shape: f32[1,128], index: 4, kind: input, shape index: {}]   ;;  %s524_s5 = inlined_call_operand.vmem [shape: f32[16,128], index: 5, kind: output, shape index: {}]  }
   0x1   :  { %11 = vsyncpa [#allocation5], 0  ;;  %s440_s18 = smov [#allocation2]   ;;  %s392_s22 = scalar_lea.hbm %s520_s1, 1024 }
   0x2   :  { %s19_s19 = sshll.u32 %s440_s18, 4  ;;  %p393_p0 = scmp.ne.s32.totalorder %s520_s1, %s392_s22  ;;  %s20_s19 = int_to_ptr.vmem [resolvable:$true] %s19_s19 }
   0x3   :  { %p396_p1 = scmp.lt.u32.totalorder %s392_s22, %s520_s1 }
   0x5   :  { %p398_p2 = pnand %p396_p1, %p393_p0 }
   0x7   :  { %401 = shalt.err (!%p398_p2)
}
   0x8   :  { %s402_s27 = scalar_lea.vmem %s20_s19, 1024  ;;  %p407_p4 = scmp.lt.s32.totalorder %s20_s19, %s20_s19 }
   0x9   :  { %p403_p3 = scmp.ne.s32.totalorder %s20_s19, %s402_s27  ;;  %p408_p5 = scmp.lt.s32.totalorder %s402_s27, %s402_s27 }
   0xb   :  { %p409_p6 = por %p408_p5, %p407_p4 }
   0xd   :  { %p410_p7 = pnand %p409_p6, %p403_p3 }
   0xf   :  { %413 = shalt.err (!%p410_p7)
}
  0x10   :  { %s441_s28 = smov 64   ;;  %s442_s29 = smov 4  }
  0x11   :  { %25 = dma.hbm_to_vmem [thread:$0]  %s520_s1, 1024, %s20_s19, [#allocation3], %s441_s28, %s441_s28, %s442_s29  }
  0x12   :  { %s443_s7 = smov [#allocation4]   ;;  %s414_s11 = scalar_lea.hbm %s522_s3, 1024 }
  0x13   :  { %s33_s8 = sshll.u32 %s443_s7, 4  ;;  %p415_p8 = scmp.ne.s32.totalorder %s522_s3, %s414_s11  ;;  %s34_s8 = int_to_ptr.vmem [resolvable:$true] %s33_s8 }
  0x14   :  { %p418_p9 = scmp.lt.u32.totalorder %s414_s11, %s522_s3 }
  0x16   :  { %p420_p10 = pnand %p418_p9, %p415_p8 }
  0x18   :  { %423 = shalt.err (!%p420_p10)
}
  0x19   :  { %s424_s16 = scalar_lea.vmem %s34_s8, 1024  ;;  %p429_p12 = scmp.lt.s32.totalorder %s34_s8, %s34_s8 }
  0x1a   :  { %p425_p11 = scmp.ne.s32.totalorder %s34_s8, %s424_s16  ;;  %p430_p13 = scmp.lt.s32.totalorder %s424_s16, %s424_s16 }
  0x1c   :  { %p431_p0 = por %p430_p13, %p429_p12 }
  0x1e   :  { %p432_p1 = pnand %p431_p0, %p425_p11 }
  0x20   :  { %435 = shalt.err (!%p432_p1)
}
  0x21   :  { %39 = dma.hbm_to_vmem [thread:$0]  %s522_s3, 1024, %s34_s8, [#allocation5], %s441_s28, %s441_s28, %s442_s29  }
  0x22   :  { %436 = dma.done.wait [#allocation3], 1024  }
  0x23   :  { %437 = vsyncadd [#allocation3], 4294966272 }
  0x24   :  { %438 = dma.done.wait [#allocation5], 1024  }
  0x25   :  { %439 = vsyncadd [#allocation5], 4294966272  ;;  %v444_v0 = vmov 0.0   ;;  %vm445_vm0 = vmmov 0   ;;  %v376_v1 = vld [vmem:[#allocation2] sm:$0xff]   ;;  %v377_v2 = vld [vmem:[#allocation2 + $0x8] sm:$0xff]  }
  0x26   :  { %329 = vmatprep.subr.bf16.mxu0 %v444_v0  ;;  %345 = vmatprep.mubr.msk.bf16.mxu0 %vm445_vm0, %v444_v0  ;;  %v378_v3 = vld [vmem:[#allocation2 + $0x10] sm:$0xff]   ;;  %v384_v4 = vld [vmem:[#allocation4] sm:$0xff]   ;;  %v379_v5 = vld [vmem:[#allocation2 + $0x18] sm:$0xff]   ;;  %v446_v15 = vmov 0  }
  0x27   :  { %349 = vmatprep.subr.bf16.mxu1 %v444_v0  ;;  %365 = vmatprep.mubr.msk.bf16.mxu1 %vm445_vm0, %v444_v0  ;;  %v385_v6 = vld [vmem:[#allocation4 + $0x8] sm:$0xff]   ;;  %v380_v7 = vld [vmem:[#allocation2 + $0x20] sm:$0xff]   ;;  %v386_v8 = vld [vmem:[#allocation4 + $0x10] sm:$0xff]  }
  0x28   :  { %330 = vmatpush3.bf16.msra.mxu0 %v376_v1  ;;  %350 = vmatpush3.bf16.msra.mxu1 %v384_v4  ;;  %v381_v9 = vld [vmem:[#allocation2 + $0x28] sm:$0xff]   ;;  %v387_v10 = vld [vmem:[#allocation4 + $0x18] sm:$0xff]   ;;  %v382_v11 = vld [vmem:[#allocation2 + $0x30] sm:$0xff]  }
  0x29   :  { %331 = vmatprep.subr.bf16.mxu0 %v444_v0  ;;  %351 = vmatprep.subr.bf16.mxu1 %v444_v0  ;;  %v49_v12 = vld [vmem:[%s519_s0] sm:$0xf]  ;;  %v50_v13 = vld [vmem:[%s519_s0 + $0x4] sm:$0xf]  ;;  %v383_v18 = vld [vmem:[#allocation2 + $0x38] sm:$0xff]  }
  0x2a   :  { %v388_v14 = vld [vmem:[#allocation4 + $0x20] sm:$0xff]   ;;  %v51_v16 = vmax.bf16 %v446_v15, %v49_v12  ;;  %v52_v17 = vmax.bf16 %v446_v15, %v50_v13  ;;  %v389_v19 = vld [vmem:[#allocation4 + $0x28] sm:$0xff]   ;;  %v390_v21 = vld [vmem:[#allocation4 + $0x30] sm:$0xff]  }
  0x2b   :  { %v391_v22 = vld [vmem:[#allocation4 + $0x38] sm:$0xff]   ;;  %v292_v23 = vld [vmem:[%s521_s2] ss:$0 sm:$0xff] }
  0x2c   :  { %332 = vmatpush3.bf16.msra.mxu0 %v377_v2  ;;  %352 = vmatpush3.bf16.msra.mxu1 %v385_v6  ;;  %v293_v20 = vcombine.low %v51_v16, %v52_v17  ;;  %v302_v31 = vld [vmem:[%s523_s4] ss:$0 sm:$0xff] }
  0x2d   :  { %333 = vmatprep.subr.bf16.mxu0 %v444_v0  ;;  %353 = vmatprep.subr.bf16.mxu1 %v444_v0 }
  0x30   :  { %334 = vmatpush3.bf16.msra.mxu0 %v378_v3  ;;  %354 = vmatpush3.bf16.msra.mxu1 %v386_v8 }
  0x31   :  { %335 = vmatprep.subr.bf16.mxu0 %v444_v0  ;;  %355 = vmatprep.subr.bf16.mxu1 %v444_v0 }
  0x34   :  { %336 = vmatpush3.bf16.msra.mxu0 %v379_v5  ;;  %356 = vmatpush3.bf16.msra.mxu1 %v387_v10 }
  0x35   :  { %337 = vmatprep.subr.bf16.mxu0 %v444_v0  ;;  %357 = vmatprep.subr.bf16.mxu1 %v444_v0 }
  0x38   :  { %338 = vmatpush3.bf16.msra.mxu0 %v380_v7  ;;  %358 = vmatpush3.bf16.msra.mxu1 %v388_v14 }
  0x39   :  { %339 = vmatprep.subr.bf16.mxu0 %v444_v0  ;;  %359 = vmatprep.subr.bf16.mxu1 %v444_v0 }
  0x3c   :  { %340 = vmatpush3.bf16.msra.mxu0 %v381_v9  ;;  %360 = vmatpush3.bf16.msra.mxu1 %v389_v19 }
  0x3d   :  { %341 = vmatprep.subr.bf16.mxu0 %v444_v0  ;;  %361 = vmatprep.subr.bf16.mxu1 %v444_v0 }
  0x40   :  { %342 = vmatpush3.bf16.msra.mxu0 %v382_v11  ;;  %362 = vmatpush3.bf16.msra.mxu1 %v390_v21 }
  0x41   :  { %343 = vmatprep.subr.bf16.mxu0 %v444_v0  ;;  %363 = vmatprep.subr.bf16.mxu1 %v444_v0 }
  0x44   :  { %344 = vmatpush3.bf16.msra.mxu0 %v383_v18  ;;  %364 = vmatpush3.bf16.msra.mxu1 %v391_v22 }
  0x47   :  { %346 = vmatmul.mubr.bf16.vlgmr.msra.gmra.mrb[0].mxu0 %v293_v20 }
 0x11a   :  { %v164_v24 = vpop.f32.mrb[0].mxu0 }
 0x11b   :  { %v347_v25 = vpop.f32.mrb[1].mxu0  ;;  %v165_v27 = vadd.f32 %v292_v23, %v164_v24 }
 0x11c   :  { %v167_v26 = vpop.f32.mrb[2].mxu0 }
 0x11d   :  { %v168_v28 = vadd.f32 %v292_v23, %v167_v26  ;;  %v348_v29 = vpop.f32.mrb[3].mxu0 }
 0x11f   :  { %v171_v30 = vpack.c.bf16 %v168_v28, %v165_v27 }
 0x121   :  { %366 = vmatmul.mubr.bf16.vlgmr.msra.gmra.mrb[0].mxu1 %v171_v30 }
 0x1f4   :  { %v277_v32 = vpop.f32.mrb[0].mxu1 }
 0x1f5   :  { %v278_v33 = vadd.f32 %v302_v31, %v277_v32  ;;  %v367_v34 = vpop.f32.mrb[1].mxu1 }
 0x1f6   :  { %v280_v35 = vpop.f32.mrb[2].mxu1 }
 0x1f7   :  { %284 = vst [vmem:[%s524_s5] sm:$0xff] %v278_v33  ;;  %v281_v36 = vadd.f32 %v302_v31, %v280_v35  ;;  %v368_v37 = vpop.f32.mrb[3].mxu1 }
 0x1f9   :  { %285 = vst [vmem:[%s524_s5 + $0x8] sm:$0xff] %v281_v36 }
 0x1fa   :  { %290 = vsyncpa [#allocation3], 1 }
 0x1fb   :  { %291 = vsyncpa [#allocation5], 1 }

</bundles_post_ra>
